<compile_context>
chip_gen: v7x
topology: tpu7x:2x2x1
jax: 0.10.0
libtpu: 0.0.40
codegen_flags: <defaults>
</compile_context>

<pallas_src>
import functools

import jax
import jax.numpy as jnp
import numpy as np
from jax import lax
from jax.experimental import pallas as pl
from jax.experimental.pallas import tpu as pltpu


def _round_up(x, m):
    return (x + m - 1) // m * m


def _pick_row_tile(n_rows, row_tile):
    """Lane-dense row tiles; keep >= 2 grid steps when possible (v7x: 2 TCs)."""
    if n_rows < 256:
        return _round_up(max(n_rows, 8), 8)            # single small block
    if n_rows >= 2 * row_tile:
        return row_tile
    return max(128, (n_rows // 2) // 128 * 128)        # split into >= 2 dense tiles


def _vmem_limit_bytes(tm, din, k, dim, ml_pad, ml_chunk, mxu_itemsize):
    """Rough per-step VMEM budget: 2x streamed tiles + 2x residents + temporaries."""
    f32 = 4
    lane = lambda n: _round_up(n, 128)
    sub = lambda n: _round_up(n, 8)
    streamed = 2 * (tm * lane(din) * f32 + tm * lane(k) * f32 + sub(k) * lane(tm) * f32)
    resident = 2 * (sub(dim) * lane(din) * mxu_itemsize + sub(dim) * 128 * f32 +
                    sub(ml_pad) * lane(dim) * mxu_itemsize)
    temps = f32 * (2 * k * ml_chunk * tm + sub(ml_chunk) * lane(tm) +
                   sub(dim) * lane(tm) + 4 * sub(k) * lane(tm) + sub(k) * lane(k))
    return int(min(max(2 * (streamed + resident + temps), 32 << 20), 64 << 20))


def _cape_kernel(q_ref, aw_ref, wT_ref, bT_ref, peT_ref, outT_ref, *,
                 max_len, ml_chunk, n_chunks):
    """One row tile of CAPE; feature-major (rows on the lane axis) inside."""
    q = q_ref[...]                                     # (TM, Din) f32, row-major
    aw = aw_ref[...]                                   # (TM, K)   f32, row-major
    WT = wT_ref[...]                                   # (dim, Din) mxu dtype
    bT = bT_ref[...]                                   # (dim, 1)   f32

    # Per-tile transposes in-kernel (XLU slot is otherwise idle) so the wrapper
    # never runs a full-array transpose / cast pass.
    qT = q.T.astype(WT.dtype)                          # (Din, TM)
    awT = aw.T                                         # (K,   TM) f32

    # pre_proj (Linear + SiLU), feature-major: h^T = W^T q^T + b  (f32 VPU/EUP).
    hT = jnp.dot(WT, qT, preferred_element_type=jnp.float32) + bT    # (dim, TM)
    hT = hT * jax.nn.sigmoid(hT)
    hTm = hT.astype(peT_ref.dtype)                     # MXU operand for E chunks

    # G = 1 - sigmoid(attn); P = suffix cumsum over K; clamp.  P stays f32.
    GT = 1.0 - jax.nn.sigmoid(awT)                     # (K, TM) f32
    k_dim, tm = GT.shape
    row = lax.broadcasted_iota(jnp.int32, (k_dim, k_dim), 0)
    col = lax.broadcasted_iota(jnp.int32, (k_dim, k_dim), 1)
    suffix_mask = jnp.where(col >= row, 1.0, 0.0)      # built in-kernel: no DMA
    # TODO(synk): on v7x replace this tiny f32 matmul with a log2(K)-step
    # pltpu.roll shift-and-add scan over the sublane axis (f32 MXU is emulated).
    PT = jnp.dot(suffix_mask, GT, preferred_element_type=jnp.float32)  # (K, TM)
    PT = jnp.minimum(PT, jnp.float32(max_len - 1))

    # Fused gather + linear interpolation with "tent" weights
    #   out[j, l] = sum_m max(0, 1 - |m - P[j, l]|) * E[m, l]
    # (== (1-frac) at floor(P), frac at ceil(P), 0 elsewhere; no float equality),
    # truncated to the reachable positions and chunked over the position axis.
    PT3 = PT[:, None, :]                                               # hoisted
    m_iota = lax.broadcasted_iota(jnp.int32, (k_dim, ml_chunk, tm), 1
                                  ).astype(jnp.float32)                # hoisted
    acc0 = jnp.zeros((k_dim, tm), jnp.float32)

    def tent_chunk(acc, pe_c, base):
        ET_c = jnp.dot(pe_c, hTm, preferred_element_type=jnp.float32)  # (mlc, TM)
        w = jnp.maximum(1.0 - jnp.abs(m_iota - (PT3 - base)), 0.0)     # (K, mlc, TM)
        return acc + jnp.sum(w * ET_c[None, :, :], axis=1)

    if n_chunks == 1:
        acc = tent_chunk(acc0, peT_ref[...], jnp.float32(0.0))
    else:
        def body(c, acc):
            start = pl.multiple_of(c * ml_chunk, ml_chunk)
            return tent_chunk(acc, peT_ref[pl.ds(start, ml_chunk), :],
                              (c * ml_chunk).astype(jnp.float32))
        acc = lax.fori_loop(0, n_chunks, body, acc0, unroll=n_chunks <= 8)

    outT_ref[...] = acc.astype(outT_ref.dtype)         # (K, TM) lane-dense store


def cape_forward(query, attn_w, W, bias, pos_emb, *,
                 mxu_dtype=jnp.bfloat16, row_tile=512, max_position_chunk=128,
                 out_dtype=jnp.float32):
    """CAPE forward.

    query   : (B, L, Din) f32      attn_w : (B, L, K) f32
    W       : (Din, dim)  f32      bias   : (1, dim)  f32
    pos_emb : (dim, max_len) f32
    Returns (B, L, K) out_dtype.
    """
    B, L, Din = query.shape
    K = attn_w.shape[-1]
    dim, max_len = pos_emb.shape
    assert W.shape == (Din, dim) and bias.size == dim

    R = B * L
    TM = _pick_row_tile(R, row_tile)
    R_pad = _round_up(R, TM)

    # P <= K (and P <= max_len-1 after the clamp): only these positions matter.
    ML_eff = min(max_len, K + 1)
    budget = 4 << 20                       # bytes for the (K, chunk, TM) temporaries
    chunk_cap = max(8, (min(int(max_position_chunk), budget // (8 * K * TM)) // 8) * 8)
    ML_chunk = min(_round_up(ML_eff, 8), chunk_cap)
    ML_pad = _round_up(ML_eff, ML_chunk)
    n_chunks = ML_pad // ML_chunk

    # Streamed inputs stay row-major f32 (no wrapper transpose / cast passes).
    q2 = query.reshape(R, Din).astype(jnp.float32)
    aw2 = attn_w.reshape(R, K).astype(jnp.float32)
    if R_pad != R:
        q2 = jnp.pad(q2, ((0, R_pad - R), (0, 0)))
        aw2 = jnp.pad(aw2, ((0, R_pad - R), (0, 0)))

    # Parameter-sized residents (prep cost negligible).
    WT = W.astype(mxu_dtype).T                            # (dim, Din)
    bT = bias.reshape(dim, 1).astype(jnp.float32)         # (dim, 1)
    peT = pos_emb[:, :ML_eff].T                           # (ML_eff, dim), truncated
    if ML_pad != ML_eff:
        peT = jnp.pad(peT, ((0, ML_pad - ML_eff), (0, 0)))
    peT = peT.astype(mxu_dtype)

    kernel = functools.partial(_cape_kernel, max_len=max_len,
                               ml_chunk=ML_chunk, n_chunks=n_chunks)
    vmem_limit = _vmem_limit_bytes(TM, Din, K, dim, ML_pad, ML_chunk,
                                   np.dtype(mxu_dtype).itemsize)

    outT = pl.pallas_call(
        kernel,
        out_shape=jax.ShapeDtypeStruct((K, R_pad), out_dtype),
        grid=(R_pad // TM,),
        in_specs=[
            pl.BlockSpec((TM, Din), lambda i: (i, 0)),        # q rows    (streamed)
            pl.BlockSpec((TM, K), lambda i: (i, 0)),          # attn rows (streamed)
            pl.BlockSpec((dim, Din), lambda i: (0, 0)),       # W^T       (resident)
            pl.BlockSpec((dim, 1), lambda i: (0, 0)),         # bias^T    (resident)
            pl.BlockSpec((ML_pad, dim), lambda i: (0, 0)),    # pos_emb^T, truncated
            # TODO(synk): on v7x add pipeline_mode=pl.Buffered(1) to the resident
            # specs above so they are not double-buffered in the 64 MiB VMEM.
        ],
        out_specs=pl.BlockSpec((K, TM), lambda i: (0, i)),    # lane-dense output
        compiler_params=pltpu.CompilerParams(
            dimension_semantics=("parallel",),
            vmem_limit_bytes=vmem_limit),
    )(q2, aw2, WT, bT, peT)

    return outT[:, :R].T.reshape(B, L, K)


def cape_reference(query, attn_w, W, bias, pos_emb):
    """Pure-JAX f32 reference mirroring the PyTorch forward (highest-precision dots)."""
    max_len = pos_emb.shape[-1]
    h = jnp.einsum("ble,ed->bld", query, W, precision="highest") + bias
    h = h * jax.nn.sigmoid(h)
    E = jnp.einsum("bld,dm->blm", h, pos_emb, precision="highest")
    G = 1.0 - jax.nn.sigmoid(attn_w)
    P = jnp.flip(jnp.cumsum(jnp.flip(G, -1), -1), -1)
    P = jnp.minimum(P, max_len - 1)
    Pc = jnp.ceil(P).astype(jnp.int32)
    Pf = jnp.floor(P).astype(jnp.int32)
    Ec = jnp.take_along_axis(E, Pc, axis=-1)
    Ef = jnp.take_along_axis(E, Pf, axis=-1)
    frac = P - jnp.floor(P)
    return frac * Ec + (1.0 - frac) * Ef


def _run_case(name, *, B, L, K, dim, embedding_dim, max_len, mxu_dtype, tol, **kw):
    key = jax.random.PRNGKey(0)
    k1, k2, k3, k4, k5 = jax.random.split(key, 5)
    query = jax.random.normal(k1, (B, L, embedding_dim), dtype=jnp.float32)
    attn_w = jax.random.normal(k2, (B, L, K), dtype=jnp.float32)
    # NOTE: torch init uses zeros for pos_emb; small random values keep the test
    # non-degenerate.
    W = 0.1 * jax.random.normal(k3, (embedding_dim, dim), dtype=jnp.float32)
    bias = 0.1 * jax.random.normal(k4, (1, dim), dtype=jnp.float32)
    pos_emb = 0.1 * jax.random.normal(k5, (dim, max_len), dtype=jnp.float32)

    ref = jax.block_until_ready(cape_reference(query, attn_w, W, bias, pos_emb))
    out = jax.block_until_ready(
        cape_forward(query, attn_w, W, bias, pos_emb, mxu_dtype=mxu_dtype, **kw))
    np.testing.assert_allclose(np.asarray(out), np.asarray(ref),
                               rtol=tol, atol=tol, err_msg=name)


if __name__ == "__main__":
    # Module-default shapes: dim=32, embedding_dim=16, max_len=dim, B=2, L=8, K=8.
    _run_case("small-f32", B=2, L=8, K=8, dim=32, embedding_dim=16, max_len=32,
              mxu_dtype=jnp.float32, tol=1e-2)
    _run_case("small-bf16", B=2, L=8, K=8, dim=32, embedding_dim=16, max_len=32,
              mxu_dtype=jnp.bfloat16, tol=5e-2)
    # Exercises the multi-step grid, row padding, and the chunked position loop.
    _run_case("tiled-f32", B=4, L=72, K=24, dim=64, embedding_dim=48, max_len=40,
              mxu_dtype=jnp.float32, tol=5e-2, max_position_chunk=16)
    print("KERNEL_OK")
</pallas_src>

<mosaic_0001>
module attributes {stable_mosaic.version = 11 : i64} {
  func.func @_cape_kernel(%arg0: i32, %arg1: memref<16x16xf32, #tpu.memory_space<vmem>>, %arg2: memref<16x8xf32, #tpu.memory_space<vmem>>, %arg3: memref<32x16xf32, #tpu.memory_space<vmem>>, %arg4: memref<32x1xf32, #tpu.memory_space<vmem>>, %arg5: memref<16x32xf32, #tpu.memory_space<vmem>>, %arg6: memref<8x16xf32, #tpu.memory_space<vmem>>) attributes {dimension_semantics = [#tpu.dimension_semantics<parallel>], iteration_bounds = array<i64: 1>, scalar_prefetch = 0 : i64, scratch_operands = 0 : i64, tpu.core_type = #tpu.core_type<tc>, window_params = [{transform_indices = @transform_0, window_bounds = array<i64: 16, 16>}, {transform_indices = @transform_1, window_bounds = array<i64: 16, 8>}, {pipeline_mode = #tpu.pipeline_mode<synchronous>, transform_indices = @transform_2, window_bounds = array<i64: 32, 16>}, {pipeline_mode = #tpu.pipeline_mode<synchronous>, transform_indices = @transform_3, window_bounds = array<i64: 32, 1>}, {pipeline_mode = #tpu.pipeline_mode<synchronous>, transform_indices = @transform_4, window_bounds = array<i64: 16, 32>}, {transform_indices = @transform_5, window_bounds = array<i64: 8, 16>}]} {
    %c0 = arith.constant 0 : index
    %c0_0 = arith.constant 0 : index
    %0 = vector.load %arg1[%c0, %c0_0] : memref<16x16xf32, #tpu.memory_space<vmem>>, vector<16x16xf32>
    %c0_1 = arith.constant 0 : index
    %c0_2 = arith.constant 0 : index
    %1 = vector.load %arg2[%c0_1, %c0_2] : memref<16x8xf32, #tpu.memory_space<vmem>>, vector<16x8xf32>
    %c0_3 = arith.constant 0 : index
    %c0_4 = arith.constant 0 : index
    %2 = vector.load %arg3[%c0_3, %c0_4] : memref<32x16xf32, #tpu.memory_space<vmem>>, vector<32x16xf32>
    %c0_5 = arith.constant 0 : index
    %c0_6 = arith.constant 0 : index
    %3 = vector.load %arg4[%c0_5, %c0_6] : memref<32x1xf32, #tpu.memory_space<vmem>>, vector<32x1xf32>
    %4 = tpu.transpose %0, [1, 0] : vector<16x16xf32> -> vector<16x16xf32>
    %5 = tpu.transpose %1, [1, 0] : vector<16x8xf32> -> vector<8x16xf32>
    %cst = arith.constant dense<0.000000e+00> : vector<32x16xf32>
    %6 = tpu.matmul %2, %4, %cst {dimension_numbers = #tpu.dot_dimension_numbers<[1], [0], [0], [1], [0, 0, 1, 1], [], []>} : vector<32x16xf32>, vector<16x16xf32>, vector<32x16xf32> -> vector<32x16xf32>
    %7 = vector.broadcast %3 : vector<32x1xf32> to vector<32x16xf32>
    %8 = arith.addf %6, %7 : vector<32x16xf32>
    %9 = arith.negf %8 : vector<32x16xf32>
    %10 = math.exp %9 : vector<32x16xf32>
    %cst_7 = arith.constant 1.000000e+00 : f32
    %11 = vector.broadcast %cst_7 : f32 to vector<32x16xf32>
    %12 = arith.addf %11, %10 : vector<32x16xf32>
    %13 = arith.divf %11, %12 : vector<32x16xf32>
    %14 = arith.mulf %8, %13 : vector<32x16xf32>
    %15 = arith.negf %5 : vector<8x16xf32>
    %16 = math.exp %15 : vector<8x16xf32>
    %cst_8 = arith.constant 1.000000e+00 : f32
    %17 = vector.broadcast %cst_8 : f32 to vector<8x16xf32>
    %18 = arith.addf %17, %16 : vector<8x16xf32>
    %19 = arith.divf %17, %18 : vector<8x16xf32>
    %cst_9 = arith.constant 1.000000e+00 : f32
    %20 = vector.broadcast %cst_9 : f32 to vector<8x16xf32>
    %21 = arith.subf %20, %19 : vector<8x16xf32>
    %22 = tpu.iota {dimensions = array<i32: 0>} : vector<8x8xi32>
    %23 = tpu.iota {dimensions = array<i32: 1>} : vector<8x8xi32>
    %24 = arith.cmpi sge, %23, %22 : vector<8x8xi32>
    %cst_10 = arith.constant 1.000000e+00 : f32
    %cst_11 = arith.constant 0.000000e+00 : f32
    %25 = vector.broadcast %cst_10 : f32 to vector<8x8xf32>
    %26 = vector.broadcast %cst_11 : f32 to vector<8x8xf32>
    %27 = arith.select %24, %25, %26 : vector<8x8xi1>, vector<8x8xf32>
    %cst_12 = arith.constant dense<0.000000e+00> : vector<8x16xf32>
    %28 = tpu.matmul %27, %21, %cst_12 {dimension_numbers = #tpu.dot_dimension_numbers<[1], [0], [0], [1], [0, 0, 1, 1], [], []>} : vector<8x8xf32>, vector<8x16xf32>, vector<8x16xf32> -> vector<8x16xf32>
    %cst_13 = arith.constant 3.100000e+01 : f32
    %29 = vector.broadcast %cst_13 : f32 to vector<8x16xf32>
    %30 = arith.minimumf %28, %29 : vector<8x16xf32>
    %31 = vector.shape_cast %30 : vector<8x16xf32> to vector<8x1x16xf32>
    %32 = tpu.iota {dimensions = array<i32: 1>} : vector<8x16x16xi32>
    %33 = arith.sitofp %32 : vector<8x16x16xi32> to vector<8x16x16xf32>
    %cst_14 = arith.constant 0.000000e+00 : f32
    %34 = vector.broadcast %cst_14 : f32 to vector<8x16xf32>
    %c0_15 = arith.constant 0 : index
    %c0_16 = arith.constant 0 : index
    %35 = vector.load %arg5[%c0_15, %c0_16] : memref<16x32xf32, #tpu.memory_space<vmem>>, vector<16x32xf32>
    %cst_17 = arith.constant dense<0.000000e+00> : vector<16x16xf32>
    %36 = tpu.matmul %35, %14, %cst_17 {dimension_numbers = #tpu.dot_dimension_numbers<[1], [0], [0], [1], [0, 0, 1, 1], [], []>} : vector<16x32xf32>, vector<32x16xf32>, vector<16x16xf32> -> vector<16x16xf32>
    %cst_18 = arith.constant 0.000000e+00 : f32
    %37 = vector.broadcast %cst_18 : f32 to vector<8x1x16xf32>
    %38 = arith.subf %31, %37 : vector<8x1x16xf32>
    %39 = vector.broadcast %38 : vector<8x1x16xf32> to vector<8x16x16xf32>
    %40 = arith.subf %33, %39 : vector<8x16x16xf32>
    %41 = math.absf %40 : vector<8x16x16xf32>
    %cst_19 = arith.constant 1.000000e+00 : f32
    %42 = vector.broadcast %cst_19 : f32 to vector<8x16x16xf32>
    %43 = arith.subf %42, %41 : vector<8x16x16xf32>
    %cst_20 = arith.constant 0.000000e+00 : f32
    %44 = vector.broadcast %cst_20 : f32 to vector<8x16x16xf32>
    %45 = arith.maximumf %43, %44 : vector<8x16x16xf32>
    %46 = vector.shape_cast %36 : vector<16x16xf32> to vector<1x16x16xf32>
    %47 = vector.broadcast %46 : vector<1x16x16xf32> to vector<8x16x16xf32>
    %48 = arith.mulf %45, %47 : vector<8x16x16xf32>
    %cst_21 = arith.constant dense<0.000000e+00> : vector<8x16xf32>
    %49 = vector.multi_reduction <add>, %48, %cst_21 [1] : vector<8x16x16xf32> to vector<8x16xf32>
    %50 = arith.addf %34, %49 : vector<8x16xf32>
    %c0_22 = arith.constant 0 : index
    %c0_23 = arith.constant 0 : index
    %51 = vector.load %arg6[%c0_22, %c0_23] : memref<8x16xf32, #tpu.memory_space<vmem>>, vector<8x16xf32>
    tpu.vector_store %arg6[%c0_22, %c0_23], %50 {strides = array<i32>} : memref<8x16xf32, #tpu.memory_space<vmem>>, vector<8x16xf32>,
    return
  }
  func.func @transform_0(%arg0: i32) -> (i32, i32) {
    %c0_i32 = arith.constant 0 : i32
    %c0_i32_0 = arith.constant 0 : i32
    return %arg0, %c0_i32 : i32, i32
  }
  func.func @transform_1(%arg0: i32) -> (i32, i32) {
    %c0_i32 = arith.constant 0 : i32
    %c0_i32_0 = arith.constant 0 : i32
    return %arg0, %c0_i32 : i32, i32
  }
  func.func @transform_2(%arg0: i32) -> (i32, i32) {
    %c0_i32 = arith.constant 0 : i32
    %c0_i32_0 = arith.constant 0 : i32
    %c0_i32_1 = arith.constant 0 : i32
    return %c0_i32, %c0_i32_0 : i32, i32
  }
  func.func @transform_3(%arg0: i32) -> (i32, i32) {
    %c0_i32 = arith.constant 0 : i32
    %c0_i32_0 = arith.constant 0 : i32
    %c0_i32_1 = arith.constant 0 : i32
    return %c0_i32, %c0_i32_0 : i32, i32
  }
  func.func @transform_4(%arg0: i32) -> (i32, i32) {
    %c0_i32 = arith.constant 0 : i32
    %c0_i32_0 = arith.constant 0 : i32
    %c0_i32_1 = arith.constant 0 : i32
    return %c0_i32, %c0_i32_0 : i32, i32
  }
  func.func @transform_5(%arg0: i32) -> (i32, i32) {
    %c0_i32 = arith.constant 0 : i32
    %c0_i32_0 = arith.constant 0 : i32
    return %c0_i32, %arg0 : i32, i32
  }
}

</mosaic_0001>

<bundles_post_ra>
// kernel: tpu_custom_call.1
= control target key start
LH: loop header
LB: loop body
LE: loop exit
PB: predicated region body
PF: predicated region fallthrough
CT: control target
= control target key end

     0   :  { %vm85_vm0 = vcmask 130048   ;;  %v799_v4 = vmov 0   ;;  %s923_s0 = inlined_call_operand.vmem [shape: f32[16,16], index: 0, kind: input, shape index: {}]   ;;  %s924_s1 = inlined_call_operand.vmem [shape: f32[16,8], index: 1, kind: input, shape index: {}]   ;;  %s925_s2 = inlined_call_operand.vmem [shape: f32[32,16], index: 2, kind: input, shape index: {}]   ;;  %s926_s3 = inlined_call_operand.vmem [shape: f32[32,1], index: 3, kind: input, shape index: {}]   ;;  %s927_s4 = inlined_call_operand.vmem [shape: f32[16,32], index: 4, kind: input, shape index: {}]   ;;  %s928_s5 = inlined_call_operand.hbm [shape: f32[8,16], index: 5, kind: output, shape index: {}]  }
   0x1   :  { %v21_v0 = vld [vmem:[%s923_s0] sm:$0xff]  ;;  %v22_v1 = vld [vmem:[%s923_s0 + $0x8] sm:$0xff]  ;;  %vm735_vm1 = vmpackc.low %vm85_vm0, %vm85_vm0  ;;  %753 = vset.pattern.permute.xlu0 %v799_v4  ;;  %754 = vset.pattern.permute.xlu1 %v799_v4 }
   0x2   :  { %v25_v2 = vld [vmem:[%s925_s2] sm:$0xff]  ;;  %v734_v3 = vpack.c.bf16 %v22_v1, %v21_v0  ;;  %v31_v6 = vld [vmem:[%s926_s3 + $0x10] sm:$0xff]  ;;  %v30_v7 = vld [vmem:[%s926_s3 + $0x8] sm:$0xff] }
   0x3   :  { %712 = vmatprep.mubr.msk.f32.mxu0 %vm85_vm0, %v25_v2  ;;  %v29_v5 = vld [vmem:[%s926_s3] sm:$0xff]  ;;  %77 = vperm.xlu1 %754, %v31_v6  }
   0x4   :  { %736 = vmatprep.subr.msk.bf16.mxu0 %vm735_vm1, %v734_v3  ;;  %67 = vperm.xlu0 %753, %v29_v5  }
   0x5   :  { %739 = vmatpush3.bf16.xpose.msk.msra.mxu0 %vm735_vm1, %v734_v3 }
   0x6   :  { %10 = vsyncpa [#allocation3], 0  ;;  %v32_v8 = vld [vmem:[%s926_s3 + $0x18] sm:$0xff]  ;;  %v26_v9 = vld [vmem:[%s925_s2 + $0x8] sm:$0xff]  ;;  %v800_v14 = vmov 0.0   ;;  %vm801_vm2 = vmmov 0   ;;  %v224_v21 = vlaneseq }
   0x7   :  { %82 = vperm.xlu1 %754, %v32_v8   ;;  %v27_v10 = vld [vmem:[%s925_s2 + $0x10] sm:$0xff]  ;;  %v28_v11 = vld [vmem:[%s925_s2 + $0x18] sm:$0xff]  ;;  %v23_v12 = vld [vmem:[%s924_s1] sm:$0xff]  ;;  %718 = vmatprep.subr.mxu1 %v800_v14  ;;  %vm230_vm4 = vcmask 64512   ;;  %vm360_vm5 = vcmask 261120   ;;  %vm650_vm6 = vcmask 1041409  }
   0x8   :  { %72 = vperm.xlu0 %753, %v30_v7   ;;  %v24_v13 = vld [vmem:[%s924_s1 + $0x8] sm:$0xff]  ;;  %720 = vmatprep.mubr.msk.f32.mxu1 %vm801_vm2, %v800_v14  ;;  %v876_v22 = vshrl.u32 %v224_v21, 7  ;;  %v227_v23 = vand.u32 127, %v224_v21  ;;  %v358_v27 = vld [vmem:[%s927_s4] sm:$0xff]  ;;  %v802_v63 = vmov 1966171168  }
   0x9   :  { %v359_v60 = vld [vmem:[%s927_s4 + $0x8] sm:$0xff]  ;;  %v308_v0 = vunpack.c.l.s4 %v802_v63  ;;  %vm652_vm7 = vcmask 1042434   ;;  %vm654_vm8 = vcmask 1043459   ;;  %vm656_vm9 = vcmask 1044484   ;;  %s803_s4 = smov [#allocation2]  }
   0xa   :  { %vm228_vm3 = vcmp.ge.s32.totalorder %v227_v23, %v876_v22  ;;  %vm658_vm10 = vcmask 1045509   ;;  %vm660_vm11 = vcmask 1046534   ;;  %s672_s17 = sshll.u32 %s803_s4, 4  ;;  %vm662_vm12 = vcmask 1047559   ;;  %s673_s17 = int_to_ptr.vmem [resolvable:$true] %s672_s17 }
   0xb   :  { %v229_v26 = vsel %vm228_vm3, 1.0, %v800_v14  ;;  %v309_v1 = vunpack.c.0.s8 %v308_v0  ;;  %v355_v14 = vadd.s32 8, %v876_v22  ;;  %s775_s18 = scalar_lea.vmem %s673_s17, 128  ;;  %p780_p1 = scmp.lt.s32.totalorder %s673_s17, %s673_s17 }
   0xc   :  { %713 = vmatmul.mubr.msk.f32.vlgmr.msra.gmra.mrb[0].mxu0 %vm85_vm0, %v26_v9  ;;  %p776_p0 = scmp.ne.s32.totalorder %s673_s17, %s775_s18  ;;  %p781_p2 = scmp.lt.s32.totalorder %s775_s18, %s775_s18 }
   0xd   :  { %715 = vmatprep.mubr.msk.f32.mxu0 %vm85_vm0, %v27_v10  ;;  %v312_v3 = vsub.s32 %v309_v1, %v876_v22  ;;  %v357_v21 = vcvt.s32.f32 %v355_v14 }
   0xe   :  { %p782_p3 = por %p781_p2, %p780_p1 }
  0x10   :  { %716 = vmatmul.mubr.msk.f32.gmra.mrb[2].mxu0 %vm85_vm0, %v28_v11  ;;  %v444_v11 = vsub.s32 0, %v876_v22  ;;  %p783_p4 = pnand %p782_p3, %p776_p0 }
  0x26   :  { %33 = vxpose.xlu0.b32.start [1/2] (short) (narrow) %v23_v12, 8 }
  0x2a   :  { %34 = vxpose.xlu0.b32.end [2/2] (short) (narrow) %v24_v13, 8 }
  0x82   :  { %v78_v28 = vpop.permute.xlu1 %77 }
  0x83   :  { %v68_v15 = vpop.permute.xlu0 %67 }
  0x86   :  { %v83_v34 = vpop.permute.xlu1 %82 }
  0x87   :  { %v73_v16 = vpop.permute.xlu0 %72 }
  0xa6   :  { %v49_v17 = vpop.trf.xlu0 }
  0xa7   :  { %v690_v18 = vmul.f32 -1.442695, %v49_v17  ;;  %v356_v17 = vcvt.s32.f32 %v876_v22 }
  0xa9   :  { %755 = vpow2.f32 %v690_v18 }
  0xb3   :  { %v756_v19 = vpop.eup %755 }
  0xb4   :  { %v220_v20 = vadd.f32 1.0, %v756_v19 }
  0xb6   :  { %757 = vrcp.f32 %v220_v20 }
  0xc0   :  { %v758_v24 = vpop.eup %757 }
  0xc1   :  { %v223_v25 = vsub.f32 1.0, %v758_v24 }
  0xc3   :  { %719 = vmatpush3.msra.mxu1 %v223_v25 }
  0xc4   :  { %721 = vmatmul.mubr.msk.f32.vlgmr.msra.gmra.mrb[0].mxu1 %vm230_vm4, %v229_v26 }
  0xc5   :  { %731 = vmatprep.mubr.msk.f32.mxu1 %vm360_vm5, %v358_v27 }
  0xdf   :  { %v714_v29 = vpop.f32.mrb[0].mxu0 }
  0xe0   :  { %v176_v30 = vadd.f32 %v714_v29, %v73_v16  ;;  %v170_v31 = vpop.f32.mrb[1].mxu0 }
  0xe1   :  { %v171_v32 = vadd.f32 %v170_v31, %v68_v15 }
  0xe2   :  { %v687_v33 = vmul.f32 -1.442695, %v176_v30 }
  0xe3   :  { %v686_v35 = vmul.f32 -1.442695, %v171_v32  ;;  %v717_v36 = vpop.f32.mrb[2].mxu0 }
  0xe4   :  { %759 = vpow2.f32 %v687_v33  ;;  %v186_v37 = vadd.f32 %v717_v36, %v83_v34  ;;  %v180_v38 = vpop.f32.mrb[3].mxu0 }
  0xe5   :  { %761 = vpow2.f32 %v686_v35  ;;  %v181_v39 = vadd.f32 %v180_v38, %v78_v28 }
  0xe6   :  { %v689_v40 = vmul.f32 -1.442695, %v186_v37 }
  0xe7   :  { %v688_v41 = vmul.f32 -1.442695, %v181_v39 }
  0xe8   :  { %763 = vpow2.f32 %v689_v40 }
  0xe9   :  { %765 = vpow2.f32 %v688_v41 }
  0xee   :  { %v760_v42 = vpop.eup %759 }
  0xef   :  { %v762_v43 = vpop.eup %761  ;;  %v202_v44 = vadd.f32 1.0, %v760_v42 }
  0xf0   :  { %v201_v45 = vadd.f32 1.0, %v762_v43 }
  0xf1   :  { %767 = vrcp.f32 %v202_v44 }
  0xf2   :  { %v764_v46 = vpop.eup %763  ;;  %769 = vrcp.f32 %v201_v45 }
  0xf3   :  { %v766_v47 = vpop.eup %765  ;;  %v204_v48 = vadd.f32 1.0, %v764_v46 }
  0xf4   :  { %v203_v49 = vadd.f32 1.0, %v766_v47 }
  0xf5   :  { %771 = vrcp.f32 %v204_v48 }
  0xf6   :  { %773 = vrcp.f32 %v203_v49 }
  0xfb   :  { %v768_v50 = vpop.eup %767 }
  0xfc   :  { %v770_v51 = vpop.eup %769  ;;  %v214_v52 = vmul.f32 %v768_v50, %v176_v30 }
  0xfd   :  { %v213_v53 = vmul.f32 %v770_v51, %v171_v32 }
  0xff   :  { %v772_v54 = vpop.eup %771  ;;  %v740_v55 = vpack.c.bf16 %v214_v52, %v213_v53 }
 0x100   :  { %v774_v56 = vpop.eup %773  ;;  %v216_v57 = vmul.f32 %v772_v54, %v186_v37 }
 0x101   :  { %v215_v58 = vmul.f32 %v774_v56, %v181_v39  ;;  %741 = vmatprep.subr.bf16.mxu1 %v740_v55 }
 0x102   :  { %743 = vmatpush3.bf16.msra.mxu1 %v740_v55 }
 0x103   :  { %v744_v59 = vpack.c.bf16 %v216_v57, %v215_v58 }
 0x105   :  { %745 = vmatprep.subr.bf16.mxu1 %v744_v59 }
 0x106   :  { %747 = vmatpush3.bf16.msra.mxu1 %v744_v59 }
 0x109   :  { %732 = vmatmul.mubr.msk.f32.vlgmr.msra.gmra.mrb[2].mxu1 %vm360_vm5, %v359_v60 }
 0x197   :  { %v300_v61 = vpop.f32.mrb[0].mxu1 }
 0x198   :  { %v722_v62 = vpop.f32.mrb[1].mxu1  ;;  %v304_v2 = vmin.f32 %v300_v61, 31.0 }
 0x19a   :  { %v306_v4 = vcombine.high %v304_v2, %v304_v2  ;;  %v313_v5 = vrot.slane %v304_v2, %v312_v3 }
 0x19c   :  { %v320_v6 = vrot.slane %v306_v4, %v312_v3  ;;  %v321_v7 = vcombine.high %v313_v5, %v313_v5  ;;  %v329_v9 = vrot.slane %v313_v5, %v312_v3 }
 0x19e   :  { %v322_v8 = vcombine.high %v320_v6, %v320_v6  ;;  %v343_v10 = vrot.slane %v321_v7, %v312_v3  ;;  %v336_v12 = vrot.slane %v320_v6, %v312_v3  ;;  %v351_v15 = vcombine.high %v329_v9, %v329_v9 }
 0x19f   :  { %v445_v20 = vrot.slane %v329_v9, %v444_v11 }
 0x1a0   :  { %v350_v13 = vrot.slane %v322_v8, %v312_v3  ;;  %v353_v16 = vcombine.high %v343_v10, %v343_v10  ;;  %v352_v18 = vcombine.high %v336_v12, %v336_v12  ;;  %v449_v23 = vrot.slane %v343_v10, %v444_v11 }
 0x1a1   :  { %v453_v24 = vrot.slane %v351_v15, %v444_v11  ;;  %v461_v26 = vrot.slane %v336_v12, %v444_v11  ;;  %v482_v30 = vsub.f32 %v356_v17, %v445_v20  ;;  %v483_v31 = vsub.f32 %v357_v21, %v445_v20 }
 0x1a2   :  { %v354_v19 = vcombine.high %v350_v13, %v350_v13  ;;  %v457_v25 = vrot.slane %v353_v16, %v444_v11  ;;  %v465_v27 = vrot.slane %v350_v13, %v444_v11  ;;  %v469_v28 = vrot.slane %v352_v18, %v444_v11 }
 0x1a3   :  { %v484_v32 = vsub.f32 %v356_v17, %v449_v23  ;;  %v485_v33 = vsub.f32 %v357_v21, %v449_v23  ;;  %v486_v34 = vsub.f32 %v356_v17, %v453_v24  ;;  %v487_v35 = vsub.f32 %v357_v21, %v453_v24 }
 0x1a4   :  { %v473_v29 = vrot.slane %v354_v19, %v444_v11  ;;  %v488_v36 = vsub.f32 %v356_v17, %v457_v25  ;;  %v489_v37 = vsub.f32 %v357_v21, %v457_v25  ;;  %v490_v22 = vsub.f32 %v356_v17, %v461_v26 }
 0x1a5   :  { %v491_v38 = vsub.f32 %v357_v21, %v461_v26  ;;  %v492_v39 = vsub.f32 %v356_v17, %v465_v27  ;;  %v493_v40 = vsub.f32 %v357_v21, %v465_v27  ;;  %v494_v41 = vsub.f32 %v356_v17, %v469_v28 }
 0x1a6   :  { %v495_v42 = vsub.f32 %v357_v21, %v469_v28  ;;  %v496_v43 = vsub.f32 %v356_v17, %v473_v29  ;;  %v498_v44 = vand.u32 2147483647, %v482_v30  ;;  %v497_v45 = vsub.f32 %v357_v21, %v473_v29 }
 0x1a7   :  { %v499_v46 = vand.u32 2147483647, %v483_v31  ;;  %v500_v47 = vand.u32 2147483647, %v484_v32  ;;  %v501_v48 = vand.u32 2147483647, %v485_v33 }
 0x1a8   :  { %v502_v49 = vand.u32 2147483647, %v486_v34  ;;  %v503_v50 = vand.u32 2147483647, %v487_v35  ;;  %v505_v51 = vand.u32 2147483647, %v489_v37 }
 0x1a9   :  { %v504_v52 = vand.u32 2147483647, %v488_v36  ;;  %v507_v53 = vand.u32 2147483647, %v491_v38  ;;  %v509_v54 = vand.u32 2147483647, %v493_v40 }
 0x1aa   :  { %v506_v55 = vand.u32 2147483647, %v490_v22  ;;  %v508_v56 = vand.u32 2147483647, %v492_v39  ;;  %v510_v57 = vand.u32 2147483647, %v494_v41 }
 0x1ab   :  { %v511_v58 = vand.u32 2147483647, %v495_v42  ;;  %v512_v59 = vand.u32 2147483647, %v496_v43  ;;  %v513_v60 = vand.u32 2147483647, %v497_v45 }
 0x1ac   :  { %v515_v61 = vsub.f32 1.0, %v499_v46  ;;  %v517_v62 = vsub.f32 1.0, %v501_v48  ;;  %v519_v63 = vsub.f32 1.0, %v503_v50  ;;  %v521_v0 = vsub.f32 1.0, %v505_v51 }
 0x1ad   :  { %v514_v1 = vsub.f32 1.0, %v498_v44  ;;  %v516_v2 = vsub.f32 1.0, %v500_v47  ;;  %v523_v3 = vsub.f32 1.0, %v507_v53  ;;  %v525_v4 = vsub.f32 1.0, %v509_v54 }
 0x1ae   :  { %v518_v5 = vsub.f32 1.0, %v502_v49  ;;  %v520_v6 = vsub.f32 1.0, %v504_v52  ;;  %v522_v7 = vsub.f32 1.0, %v506_v55  ;;  %v524_v8 = vsub.f32 1.0, %v508_v56 }
 0x1af   :  { %v526_v9 = vsub.f32 1.0, %v510_v57  ;;  %v527_v10 = vsub.f32 1.0, %v511_v58  ;;  %v528_v11 = vsub.f32 1.0, %v512_v59  ;;  %v529_v12 = vsub.f32 1.0, %v513_v60 }
 0x1b0   :  { %v531_v13 = vmax.f32 %v515_v61, 0.0  ;;  %v533_v14 = vmax.f32 %v517_v62, 0.0  ;;  %v535_v15 = vmax.f32 %v519_v63, 0.0  ;;  %v537_v16 = vmax.f32 %v521_v0, 0.0 }
 0x1b1   :  { %v530_v17 = vmax.f32 %v514_v1, 0.0  ;;  %v532_v18 = vmax.f32 %v516_v2, 0.0  ;;  %v539_v19 = vmax.f32 %v523_v3, 0.0  ;;  %v541_v20 = vmax.f32 %v525_v4, 0.0 }
 0x1b2   :  { %v534_v21 = vmax.f32 %v518_v5, 0.0  ;;  %v536_v23 = vmax.f32 %v520_v6, 0.0  ;;  %v538_v24 = vmax.f32 %v522_v7, 0.0  ;;  %v540_v25 = vmax.f32 %v524_v8, 0.0 }
 0x1b3   :  { %v542_v26 = vmax.f32 %v526_v9, 0.0  ;;  %v543_v27 = vmax.f32 %v527_v10, 0.0  ;;  %v544_v28 = vmax.f32 %v528_v11, 0.0  ;;  %v545_v29 = vmax.f32 %v529_v12, 0.0 }
 0x1dc   :  { %v733_v30 = vpop.f32.mrb[2].mxu1 }
 0x1dd   :  { %v547_v31 = vmul.f32 %v733_v30, %v531_v13  ;;  %v549_v32 = vmul.f32 %v733_v30, %v533_v14  ;;  %v551_v33 = vmul.f32 %v733_v30, %v535_v15  ;;  %v553_v34 = vmul.f32 %v733_v30, %v537_v16  ;;  %v433_v35 = vpop.f32.mrb[3].mxu1 }
 0x1de   :  { %v555_v36 = vmul.f32 %v733_v30, %v539_v19  ;;  %v557_v37 = vmul.f32 %v733_v30, %v541_v20  ;;  %v546_v22 = vmul.f32 %v530_v17, %v433_v35  ;;  %v548_v38 = vmul.f32 %v532_v18, %v433_v35 }
 0x1df   :  { %v550_v39 = vmul.f32 %v534_v21, %v433_v35  ;;  %v552_v40 = vmul.f32 %v536_v23, %v433_v35  ;;  %v554_v41 = vmul.f32 %v538_v24, %v433_v35  ;;  %v556_v42 = vmul.f32 %v540_v25, %v433_v35 }
 0x1e0   :  { %v558_v43 = vmul.f32 %v542_v26, %v433_v35  ;;  %v560_v44 = vmul.f32 %v544_v28, %v433_v35  ;;  %v562_v45 = vsel %vm85_vm0, %v546_v22, 0.0  ;;  %v563_v46 = vsel %vm85_vm0, %v547_v31, 0.0 }
 0x1e1   :  { %v564_v47 = vadd.f32 %v563_v46, %v562_v45  ;;  %v571_v48 = vsel %vm85_vm0, %v548_v38, 0.0  ;;  %v572_v49 = vsel %vm85_vm0, %v549_v32, 0.0  ;;  %v580_v50 = vsel %vm85_vm0, %v550_v39, 0.0 }
 0x1e2   :  { %v573_v51 = vadd.f32 %v572_v49, %v571_v48  ;;  %v581_v52 = vsel %vm85_vm0, %v551_v33, 0.0  ;;  %v589_v53 = vsel %vm85_vm0, %v552_v40, 0.0  ;;  %v590_v54 = vsel %vm85_vm0, %v553_v34, 0.0 }
 0x1e3   :  { %v565_v55 = vrot.slane %v564_v47, 4  ;;  %v582_v56 = vadd.f32 %v581_v52, %v580_v50  ;;  %v591_v57 = vadd.f32 %v590_v54, %v589_v53  ;;  %v598_v58 = vsel %vm85_vm0, %v554_v41, 0.0 }
 0x1e4   :  { %v574_v59 = vrot.slane %v573_v51, 4  ;;  %v599_v60 = vsel %vm85_vm0, %v555_v36, 0.0  ;;  %v607_v61 = vsel %vm85_vm0, %v556_v42, 0.0  ;;  %v559_v62 = vmul.f32 %v733_v30, %v543_v27 }
 0x1e5   :  { %v566_v63 = vadd.f32 %v565_v55, %v564_v47  ;;  %v583_v0 = vrot.slane %v582_v56, 4  ;;  %v592_v1 = vrot.slane %v591_v57, 4  ;;  %v600_v2 = vadd.f32 %v599_v60, %v598_v58 }
 0x1e6   :  { %v575_v3 = vadd.f32 %v574_v59, %v573_v51  ;;  %v561_v4 = vmul.f32 %v733_v30, %v545_v29  ;;  %v608_v5 = vsel %vm85_vm0, %v557_v37, 0.0  ;;  %v616_v6 = vsel %vm85_vm0, %v558_v43, 0.0 }
 0x1e7   :  { %v567_v7 = vrot.slane %v566_v63, 2  ;;  %v584_v8 = vadd.f32 %v583_v0, %v582_v56  ;;  %v593_v9 = vadd.f32 %v592_v1, %v591_v57  ;;  %v601_v10 = vrot.slane %v600_v2, 4 }
 0x1e8   :  { %v576_v11 = vrot.slane %v575_v3, 2  ;;  %v609_v12 = vadd.f32 %v608_v5, %v607_v61  ;;  %v617_v13 = vsel %vm85_vm0, %v559_v62, 0.0  ;;  %v625_v14 = vsel %vm85_vm0, %v560_v44, 0.0 }
 0x1e9   :  { %v568_v15 = vadd.f32 %v567_v7, %v566_v63  ;;  %v585_v16 = vrot.slane %v584_v8, 2  ;;  %v594_v17 = vrot.slane %v593_v9, 2  ;;  %v602_v18 = vadd.f32 %v601_v10, %v600_v2 }
 0x1ea   :  { %v577_v19 = vadd.f32 %v576_v11, %v575_v3  ;;  %v610_v20 = vrot.slane %v609_v12, 4  ;;  %v618_v21 = vadd.f32 %v617_v13, %v616_v6  ;;  %v626_v23 = vsel %vm85_vm0, %v561_v4, 0.0 }
 0x1eb   :  { %v569_v24 = vrot.slane %v568_v15, 1  ;;  %v586_v25 = vadd.f32 %v585_v16, %v584_v8  ;;  %v595_v26 = vadd.f32 %v594_v17, %v593_v9  ;;  %v603_v27 = vrot.slane %v602_v18, 2 }
 0x1ec   :  { %v578_v28 = vrot.slane %v577_v19, 1  ;;  %v611_v29 = vadd.f32 %v610_v20, %v609_v12  ;;  %v619_v30 = vrot.slane %v618_v21, 4  ;;  %v627_v31 = vadd.f32 %v626_v23, %v625_v14 }
 0x1ed   :  { %v570_v32 = vadd.f32 %v569_v24, %v568_v15  ;;  %v587_v33 = vrot.slane %v586_v25, 1  ;;  %v596_v34 = vrot.slane %v595_v26, 1  ;;  %v604_v35 = vadd.f32 %v603_v27, %v602_v18 }
 0x1ee   :  { %v579_v36 = vadd.f32 %v578_v28, %v577_v19  ;;  %v612_v37 = vrot.slane %v611_v29, 2  ;;  %v620_v22 = vadd.f32 %v619_v30, %v618_v21  ;;  %v628_v38 = vrot.slane %v627_v31, 4 }
 0x1ef   :  { %v588_v39 = vadd.f32 %v587_v33, %v586_v25  ;;  %v597_v40 = vadd.f32 %v596_v34, %v595_v26  ;;  %v605_v41 = vrot.slane %v604_v35, 1 }
 0x1f0   :  { %v613_v42 = vadd.f32 %v612_v37, %v611_v29  ;;  %v621_v43 = vrot.slane %v620_v22, 2  ;;  %v629_v44 = vadd.f32 %v628_v38, %v627_v31  ;;  %v651_v45 = vsel %vm650_vm6, %v579_v36, %v570_v32 }
 0x1f1   :  { %v606_v46 = vadd.f32 %v605_v41, %v604_v35  ;;  %v653_v47 = vsel %vm652_vm7, %v588_v39, %v651_v45 }
 0x1f2   :  { %v614_v48 = vrot.slane %v613_v42, 1  ;;  %v622_v49 = vadd.f32 %v621_v43, %v620_v22  ;;  %v630_v50 = vrot.slane %v629_v44, 2  ;;  %v655_v51 = vsel %vm654_vm8, %v597_v40, %v653_v47 }
 0x1f3   :  { %v657_v52 = vsel %vm656_vm9, %v606_v46, %v655_v51 }
 0x1f4   :  { %v615_v53 = vadd.f32 %v614_v48, %v613_v42  ;;  %v623_v54 = vrot.slane %v622_v49, 1  ;;  %v631_v55 = vadd.f32 %v630_v50, %v629_v44 }
 0x1f6   :  { %v624_v56 = vadd.f32 %v623_v54, %v622_v49  ;;  %v632_v57 = vrot.slane %v631_v55, 1  ;;  %v659_v58 = vsel %vm658_vm10, %v615_v53, %v657_v52 }
 0x1f8   :  { %v633_v59 = vadd.f32 %v632_v57, %v631_v55  ;;  %v661_v60 = vsel %vm660_vm11, %v624_v56, %v659_v58 }
 0x1fa   :  { %v663_v61 = vsel %vm662_vm12, %v633_v59, %v661_v60 }
 0x1fb   :  { %665 = vst.msk [vmem:[#allocation2] sm:$0xff] %vm85_vm0, %v663_v61 }
 0x1fc   :  { %786 = shalt.err (!%p783_p4)
}
 0x1fd   :  { %s787_s21 = scalar_lea.hbm %s928_s5, 128 }
 0x1fe   :  { %p788_p5 = scmp.ne.s32.totalorder %s928_s5, %s787_s21  ;;  %p791_p6 = scmp.lt.u32.totalorder %s787_s21, %s928_s5 }
 0x200   :  { %p793_p7 = pnand %p791_p6, %p788_p5 }
 0x202   :  { %796 = shalt.err (!%p793_p7)
}
 0x203   :  { %675 = dma.vmem_to_hbm [thread:$0]  %s673_s17, 128, %s928_s5, [#allocation3]  }
 0x204   :  { %797 = dma.done.wait [#allocation3], 128  }
 0x205   :  { %798 = vsyncadd [#allocation3], 4294967168 }
 0x206   :  { %679 = vsyncpa [#allocation3], 1 }

</bundles_post_ra>
